<compile_context>
chip_gen: v5e
topology: v5e:2x2
jax: 0.10.0
libtpu: 0.0.40
codegen_flags: <defaults>
</compile_context>

<pallas_src>
import jax
import jax.numpy as jnp
from jax.experimental import pallas as pl
from jax.experimental.pallas import tpu as pltpu


def _abs_kernel(x_ref, o_ref):
    # Elementwise |x| on the whole VMEM tile (pure VPU op; kernel is DMA-bound).
    o_ref[...] = jnp.abs(x_ref[...])


_LANE = 128
_SMALL_BYTES = 512 * 1024        # single-block fast path only below this
_MIN_GRID_STEPS = 8              # keep the DMA pipeline in steady state
_FAST_VMEM_LIMIT = 32 * 1024 * 1024


def _chip_tuned_params():
    """Returns (target_block_bytes, buffer_count, vmem_limit_bytes)."""
    target = 4 * 1024 * 1024          # v5e/v6e: measured HBM-roofline plateau
    bufs = 3                          # 3 bufs * 2 (in+out) * 4 MiB = 24 MiB
    vmem_limit = 32 * 1024 * 1024
    try:
        info = pltpu.get_tpu_info()
        vmem_cap = getattr(info, "vmem_capacity_bytes", 0)
        if 0 < vmem_cap <= 64 * 1024 * 1024:
            # v7x (64 MiB VMEM/TC, ~3.2 TB/s HBM): bigger blocks, shallower
            # pipeline -> 2 bufs * 2 * 8 MiB = 32 MiB, limit raised to 40 MiB.
            target = 8 * 1024 * 1024
            bufs = 2
            vmem_limit = 40 * 1024 * 1024
    except Exception:
        pass  # fall back to the v5e/v6e-safe defaults
    return target, bufs, vmem_limit


def abs_block(x: jax.Array) -> jax.Array:
    """Pallas equivalent of AbsBlock.forward: y = |x| (same shape & dtype)."""
    orig_shape = x.shape
    n = x.size
    if n == 0:
        return x

    # Widest lane-dense last dim that divides n exactly -> zero padding.
    width = 0
    for w in (4096, 2048, 1024, 512, 256, 128):
        if n % w == 0:
            width = w
            break
    if width == 0:
        # TODO(synk): element counts not divisible by 128 fall back to XLA abs
        # (a lane-aligned view is impossible without an extra HBM copy).
        return jnp.abs(x)

    rows = n // width
    x2d = x.reshape(rows, width)          # free: contiguous row-major view
    itemsize = jnp.dtype(x.dtype).itemsize
    total_bytes = n * itemsize

    # Fast path: tiny arrays as a single VMEM block (pipeline overhead would
    # dominate); explicit vmem limit so v5e's 16 MiB default is never an issue.
    if total_bytes <= _SMALL_BYTES:
        y2d = pl.pallas_call(
            _abs_kernel,
            out_shape=jax.ShapeDtypeStruct((rows, width), x.dtype),
            compiler_params=pltpu.CompilerParams(
                vmem_limit_bytes=_FAST_VMEM_LIMIT),
        )(x2d)
        return y2d.reshape(orig_shape)

    # Tiled, pipelined path.
    target_block, buffer_count, vmem_limit = _chip_tuned_params()
    sublane = max(8, 32 // itemsize)      # 8 f32, 16 bf16, 32 int8/fp8

    # Row tile from the target block size...
    row_tile = target_block // (width * itemsize)
    row_tile = max(sublane, (row_tile // sublane) * sublane)
    # ...capped so the grid has >= _MIN_GRID_STEPS steps (pipeline steady
    # state; several blocks per TensorCore on v7x).
    cap = pl.cdiv(rows, _MIN_GRID_STEPS)
    cap = max(sublane, ((cap + sublane - 1) // sublane) * sublane)
    row_tile = min(row_tile, cap)

    grid = (pl.cdiv(rows, row_tile),)     # partial last block handled by Pallas

    y2d = pl.pallas_call(
        _abs_kernel,
        out_shape=jax.ShapeDtypeStruct((rows, width), x.dtype),
        grid_spec=pltpu.PrefetchScalarGridSpec(
            num_scalar_prefetch=0,
            grid=grid,
            in_specs=[pl.BlockSpec((row_tile, width), lambda i: (i, 0),
                                   pipeline_mode=pl.Buffered(buffer_count))],
            out_specs=pl.BlockSpec((row_tile, width), lambda i: (i, 0),
                                   pipeline_mode=pl.Buffered(buffer_count)),
        ),
        compiler_params=pltpu.CompilerParams(
            # TODO(synk): if xprof shows only one v7x TC active, switch this
            # grid axis to pltpu.CORE_PARALLEL.
            dimension_semantics=("parallel",),
            vmem_limit_bytes=vmem_limit,
        ),
        cost_estimate=pl.CostEstimate(
            flops=n, transcendentals=0, bytes_accessed=2 * total_bytes),
    )(x2d)
    return y2d.reshape(orig_shape)


if __name__ == "__main__":
    key = jax.random.PRNGKey(0)

    # Small NCHW input consistent with a conv-style block: batch=2, C=4, H=W=16.
    x = jax.random.normal(key, (2, 4, 16, 16), dtype=jnp.float32)
    y = abs_block(x)
    jax.block_until_ready(y)
    assert y.shape == x.shape and y.dtype == x.dtype
    assert jnp.allclose(y, jnp.abs(x))

    # Moderate input (~2 MiB) to exercise the tiled, pipelined path as well.
    x_big = jax.random.normal(key, (32, 128, 128), dtype=jnp.float32) - 0.5
    y_big = abs_block(x_big)
    jax.block_until_ready(y_big)
    assert y_big.shape == x_big.shape and y_big.dtype == x_big.dtype
    assert jnp.allclose(y_big, jnp.abs(x_big))

    print("KERNEL_OK")
</pallas_src>

<mosaic_0001>
module attributes {stable_mosaic.version = 11 : i64} {
  func.func @_abs_kernel(%arg0: memref<1x2048xf32, #tpu.memory_space<vmem>>, %arg1: memref<1x2048xf32, #tpu.memory_space<vmem>>) attributes {dimension_semantics = [], scalar_prefetch = 0 : i64, scratch_operands = 0 : i64, tpu.core_type = #tpu.core_type<tc>} {
    %c0 = arith.constant 0 : index
    %c0_0 = arith.constant 0 : index
    %0 = vector.load %arg0[%c0, %c0_0] : memref<1x2048xf32, #tpu.memory_space<vmem>>, vector<1x2048xf32>
    %1 = math.absf %0 : vector<1x2048xf32>
    %c0_1 = arith.constant 0 : index
    %c0_2 = arith.constant 0 : index
    %2 = vector.load %arg1[%c0_1, %c0_2] : memref<1x2048xf32, #tpu.memory_space<vmem>>, vector<1x2048xf32>
    tpu.vector_store %arg1[%c0_1, %c0_2], %1 {strides = array<i32>} : memref<1x2048xf32, #tpu.memory_space<vmem>>, vector<1x2048xf32>,
    return
  }
}

</mosaic_0001>

<bundles_post_ra>
// kernel: tpu_custom_call.1
= control target key start
LH: loop header
LB: loop body
LE: loop exit
PB: predicated region body
PF: predicated region fallthrough
CT: control target
= control target key end

     0   :  { %6 = vsyncpa [#allocation3], 0  ;;  %s118_s0 = inlined_call_operand.hbm [shape: f32[1,2048], index: 0, kind: input, shape index: {}]   ;;  %s119_s1 = inlined_call_operand.hbm [shape: f32[1,2048], index: 1, kind: output, shape index: {}]  }
   0x1   :  { %7 = vsyncpa [#allocation4], 0  ;;  %s13_s8 = sshll.u32 %s118_s0, 4  ;;  %s100_s9 = smov [#allocation2]   ;;  %s14_s8 = int_to_ptr.hbm [resolvable:$true] %s13_s8 }
   0x2   :  { %s15_s10 = sshll.u32 %s100_s9, 4  ;;  %s16_s10 = int_to_ptr.vmem [resolvable:$true] %s15_s10 }
   0x3   :  { %18 = dma.hbm_to_vmem [thread:$0]  %s14_s8, 256, %s16_s10, [#allocation3]  }
   0x4   :  { %96 = dma.done.wait [#allocation3], 256  }
   0x5   :  { %97 = vsyncadd [#allocation3], 4294967040  ;;  %s101_s11 = smov [#allocation5]   ;;  %s36_s15 = sshll.u32 %s119_s1, 4  ;;  %v23_v0 = vld [vmem:[#allocation2] sm:$0xff]  ;;  %v24_v1 = vld [vmem:[#allocation2 + $0x8] sm:$0xff]  ;;  %s37_s15 = int_to_ptr.hbm [resolvable:$true] %s36_s15 }
   0x6   :  { %s34_s12 = sshll.u32 %s101_s11, 4  ;;  %v25_v2 = vand.u32 2147483647, %v23_v0  ;;  %v26_v3 = vand.u32 2147483647, %v24_v1  ;;  %s35_s12 = int_to_ptr.vmem [resolvable:$true] %s34_s12 }
   0x8   :  { %27 = vst [vmem:[#allocation5] sm:$0xff] %v25_v2 }
   0x9   :  { %28 = vst [vmem:[#allocation5 + $0x8] sm:$0xff] %v26_v3 }
   0xa   :  { %39 = dma.vmem_to_hbm [thread:$0]  %s35_s12, 256, %s37_s15, [#allocation4]  }
   0xb   :  { %98 = dma.done.wait [#allocation4], 256  }
   0xc   :  { %99 = vsyncadd [#allocation4], 4294967040 }
   0xd   :  { %44 = vsyncpa [#allocation3], 1 }
   0xe   :  { %45 = vsyncpa [#allocation4], 1 }

</bundles_post_ra>
